<compile_context>
chip_gen: v5e
topology: v5e:2x2
jax: 0.10.0
libtpu: 0.0.40
codegen_flags: <defaults>
</compile_context>

<pallas_src>
from functools import partial

import jax
import jax.numpy as jnp
from jax import lax
from jax.experimental import pallas as pl
from jax.experimental.pallas import tpu as pltpu


def _mha_kernel(x_ref, wqkv_t_ref, wo_t_ref, bo_ref, o_ref, *, num_heads, scale):
    """One grid step = one batch element.

    x_ref      : (1, N, H)  input tokens (compute dtype, e.g. bf16)
    wqkv_t_ref : (H, 3H)    fused qkv projection weight, pre-transposed
    wo_t_ref   : (H, H)     output projection weight, pre-transposed
    bo_ref     : (1, H)     output projection bias (f32)
    o_ref      : (1, N, H)  output tokens
    """
    x = x_ref[0]                                      # (N, H)
    n, hidden = x.shape
    d = hidden // num_heads
    cdt = x.dtype                                     # MXU operand dtype (bf16)

    # Fused QKV projection: single full-width MXU matmul, f32 accumulation.
    qkv = jnp.dot(x, wqkv_t_ref[...],
                  preferred_element_type=jnp.float32)  # (N, 3H) f32

    q = (qkv[:, :hidden] * scale).astype(cdt)          # scale folded pre-cast
    k = qkv[:, hidden:2 * hidden].astype(cdt)
    v = qkv[:, 2 * hidden:].astype(cdt)

    head_outs = []
    for h in range(num_heads):                         # small & static -> unrolled
        qh = q[:, h * d:(h + 1) * d]                   # (N, d)
        kh = k[:, h * d:(h + 1) * d]
        vh = v[:, h * d:(h + 1) * d]

        # scores: contract the head dim directly -- no in-kernel transpose.
        s = lax.dot_general(qh, kh, (((1,), (1,)), ((), ())),
                            preferred_element_type=jnp.float32)   # (N, N) f32

        m = jnp.max(s, axis=-1, keepdims=True)
        p = jnp.exp(s - m)                                         # f32 (EUP)
        l = jnp.sum(p, axis=-1, keepdims=True)                     # (N, 1) f32
        inv = pl.reciprocal(l, approx=True)                        # EUP, ~free

        oh = jnp.dot(p.astype(cdt), vh,
                     preferred_element_type=jnp.float32)           # (N, d) f32
        head_outs.append(oh * inv)       # normalize the small (N,d) slab, not (N,N)

    heads = jnp.concatenate(head_outs, axis=-1).astype(cdt)        # (N, H)

    # Output projection: one full-depth matmul + a single broadcast bias add.
    out = jnp.dot(heads, wo_t_ref[...], preferred_element_type=jnp.float32)
    out = out + bo_ref[...]                                        # (1,H) bcast
    o_ref[0] = out.astype(o_ref.dtype)


def attention_forward(x, w_qkv, w_out, b_out, num_heads,
                      compute_dtype=jnp.bfloat16):
    """Pallas-backed forward pass equivalent to Attention.forward (eval mode)."""
    B, N, H = x.shape
    assert H % num_heads == 0
    scale = (H / num_heads) ** (-0.5)

    out_dtype = x.dtype
    xc = jnp.asarray(x).astype(compute_dtype)
    wqkv_t = jnp.asarray(w_qkv).T.astype(compute_dtype)     # (H, 3H), pre-transposed
    wo_t = jnp.asarray(w_out).T.astype(compute_dtype)       # (H, H),  pre-transposed
    bo = jnp.asarray(b_out).reshape(1, H).astype(jnp.float32)

    kernel = partial(_mha_kernel, num_heads=num_heads, scale=scale)

    return pl.pallas_call(
        kernel,
        out_shape=jax.ShapeDtypeStruct((B, N, H), out_dtype),
        grid_spec=pltpu.PrefetchScalarGridSpec(
            num_scalar_prefetch=0,
            grid=(B,),
            in_specs=[
                pl.BlockSpec((1, N, H), lambda b: (b, 0, 0)),      # x
                pl.BlockSpec((H, 3 * H), lambda b: (0, 0)),        # W_qkv^T
                pl.BlockSpec((H, H), lambda b: (0, 0)),            # W_out^T
                pl.BlockSpec((1, H), lambda b: (0, 0)),            # b_out
            ],
            out_specs=pl.BlockSpec((1, N, H), lambda b: (b, 0, 0)),
        ),
        compiler_params=pltpu.CompilerParams(
            dimension_semantics=("parallel",),
            vmem_limit_bytes=64 * 1024 * 1024,
        ),
    )(xc, wqkv_t, wo_t, bo)


def attention_reference(x, w_qkv, w_out, b_out, num_heads):
    """Pure-JAX reference mirroring the PyTorch module exactly (f32)."""
    B, N, H = x.shape
    d = H // num_heads
    scale = (H / num_heads) ** (-0.5)
    qkv = x @ w_qkv.T                                      # (B, N, 3H)
    q, k, v = jnp.split(qkv, 3, axis=-1)

    def to_heads(t):
        return t.reshape(B, N, num_heads, d).transpose(0, 2, 1, 3)

    q = to_heads(q) * scale
    k = to_heads(k)
    v = to_heads(v)
    s = jnp.einsum('bhid,bhjd->bhij', q, k)
    p = jax.nn.softmax(s, axis=-1)
    o = jnp.einsum('bhij,bhjd->bhid', p, v)
    o = o.transpose(0, 2, 1, 3).reshape(B, N, H)
    return o @ w_out.T + b_out


if __name__ == "__main__":
    # Small shapes consistent with the module's forward: x (B, N, H)
    B, N, H = 2, 8, 32
    num_heads = 4
    dropout = 0.1  # identity in eval mode

    key = jax.random.PRNGKey(0)
    kx, kqkv, kwo, kbo = jax.random.split(key, 4)

    x = jax.random.normal(kx, (B, N, H), dtype=jnp.float32)
    # Deterministic synthetic parameters (torch Linear layout: (out, in)).
    w_qkv = 0.05 * jax.random.normal(kqkv, (3 * H, H), dtype=jnp.float32)
    w_out = 0.05 * jax.random.normal(kwo, (H, H), dtype=jnp.float32)
    b_out = 0.05 * jax.random.normal(kbo, (H,), dtype=jnp.float32)

    out = attention_forward(x, w_qkv, w_out, b_out, num_heads)
    out = jax.block_until_ready(out)

    ref = attention_reference(x, w_qkv, w_out, b_out, num_heads)
    assert out.shape == (B, N, H)
    assert out.dtype == x.dtype
    # bf16 MXU operands + approx reciprocal => looser tolerance than pure f32.
    assert jnp.allclose(out, ref, atol=3e-2, rtol=3e-2), "mismatch vs reference"

    print("KERNEL_OK")
</pallas_src>

<mosaic_0001>
module attributes {stable_mosaic.version = 11 : i64} {
  func.func @_mha_kernel(%arg0: i32, %arg1: memref<1x8x32xbf16, #tpu.memory_space<vmem>>, %arg2: memref<32x96xbf16, #tpu.memory_space<vmem>>, %arg3: memref<32x32xbf16, #tpu.memory_space<vmem>>, %arg4: memref<1x32xf32, #tpu.memory_space<vmem>>, %arg5: memref<1x8x32xf32, #tpu.memory_space<vmem>>) attributes {dimension_semantics = [#tpu.dimension_semantics<parallel>], iteration_bounds = array<i64: 2>, scalar_prefetch = 0 : i64, scratch_operands = 0 : i64, tpu.core_type = #tpu.core_type<tc>, window_params = [{transform_indices = @transform_0, window_bounds = array<i64: 1, 8, 32>}, {pipeline_mode = #tpu.pipeline_mode<synchronous>, transform_indices = @transform_1, window_bounds = array<i64: 32, 96>}, {pipeline_mode = #tpu.pipeline_mode<synchronous>, transform_indices = @transform_2, window_bounds = array<i64: 32, 32>}, {pipeline_mode = #tpu.pipeline_mode<synchronous>, transform_indices = @transform_3, window_bounds = array<i64: 1, 32>}, {transform_indices = @transform_4, window_bounds = array<i64: 1, 8, 32>}]} {
    %c0 = arith.constant 0 : index
    %c0_0 = arith.constant 0 : index
    %c0_1 = arith.constant 0 : index
    %0 = vector.load %arg1[%c0, %c0_0, %c0_1] : memref<1x8x32xbf16, #tpu.memory_space<vmem>>, vector<1x8x32xbf16>
    %1 = vector.shape_cast %0 : vector<1x8x32xbf16> to vector<8x32xbf16>
    %c0_2 = arith.constant 0 : index
    %c0_3 = arith.constant 0 : index
    %2 = vector.load %arg2[%c0_2, %c0_3] : memref<32x96xbf16, #tpu.memory_space<vmem>>, vector<32x96xbf16>
    %cst = arith.constant dense<0.000000e+00> : vector<8x96xf32>
    %3 = tpu.matmul %1, %2, %cst {dimension_numbers = #tpu.dot_dimension_numbers<[1], [0], [0], [1], [0, 0, 1, 1], [], []>} : vector<8x32xbf16>, vector<32x96xbf16>, vector<8x96xf32> -> vector<8x96xf32>
    %4 = vector.extract_strided_slice %3 {offsets = [0, 0], sizes = [8, 32], strides = [1, 1]} : vector<8x96xf32> to vector<8x32xf32>
    %cst_4 = arith.constant 0.353553385 : f32
    %5 = vector.broadcast %cst_4 : f32 to vector<8x32xf32>
    %6 = arith.mulf %4, %5 : vector<8x32xf32>
    %7 = arith.truncf %6 : vector<8x32xf32> to vector<8x32xbf16>
    %8 = vector.extract_strided_slice %3 {offsets = [0, 32], sizes = [8, 32], strides = [1, 1]} : vector<8x96xf32> to vector<8x32xf32>
    %9 = arith.truncf %8 : vector<8x32xf32> to vector<8x32xbf16>
    %10 = vector.extract_strided_slice %3 {offsets = [0, 64], sizes = [8, 32], strides = [1, 1]} : vector<8x96xf32> to vector<8x32xf32>
    %11 = arith.truncf %10 : vector<8x32xf32> to vector<8x32xbf16>
    %12 = vector.extract_strided_slice %7 {offsets = [0, 0], sizes = [8, 8], strides = [1, 1]} : vector<8x32xbf16> to vector<8x8xbf16>
    %13 = vector.extract_strided_slice %9 {offsets = [0, 0], sizes = [8, 8], strides = [1, 1]} : vector<8x32xbf16> to vector<8x8xbf16>
    %14 = vector.extract_strided_slice %11 {offsets = [0, 0], sizes = [8, 8], strides = [1, 1]} : vector<8x32xbf16> to vector<8x8xbf16>
    %cst_5 = arith.constant dense<0.000000e+00> : vector<8x8xf32>
    %15 = tpu.matmul %12, %13, %cst_5 {dimension_numbers = #tpu.dot_dimension_numbers<[1], [1], [0], [0], [0, 0, 1, 0], [], []>} : vector<8x8xbf16>, vector<8x8xbf16>, vector<8x8xf32> -> vector<8x8xf32>
    %cst_6 = arith.constant dense<0xFF800000> : vector<8xf32>
    %16 = vector.multi_reduction <maximumf>, %15, %cst_6 [1] : vector<8x8xf32> to vector<8xf32>
    %17 = vector.shape_cast %16 : vector<8xf32> to vector<8x1xf32>
    %18 = vector.broadcast %17 : vector<8x1xf32> to vector<8x8xf32>
    %19 = arith.subf %15, %18 : vector<8x8xf32>
    %20 = math.exp %19 : vector<8x8xf32>
    %cst_7 = arith.constant dense<0.000000e+00> : vector<8xf32>
    %21 = vector.multi_reduction <add>, %20, %cst_7 [1] : vector<8x8xf32> to vector<8xf32>
    %22 = vector.shape_cast %21 : vector<8xf32> to vector<8x1xf32>
    %23 = tpu.reciprocal %22 {approx = true} : vector<8x1xf32> -> vector<8x1xf32>
    %24 = arith.truncf %20 : vector<8x8xf32> to vector<8x8xbf16>
    %cst_8 = arith.constant dense<0.000000e+00> : vector<8x8xf32>
    %25 = tpu.matmul %24, %14, %cst_8 {dimension_numbers = #tpu.dot_dimension_numbers<[1], [0], [0], [1], [0, 0, 1, 1], [], []>} : vector<8x8xbf16>, vector<8x8xbf16>, vector<8x8xf32> -> vector<8x8xf32>
    %26 = vector.broadcast %23 : vector<8x1xf32> to vector<8x8xf32>
    %27 = arith.mulf %25, %26 : vector<8x8xf32>
    %28 = vector.extract_strided_slice %7 {offsets = [0, 8], sizes = [8, 8], strides = [1, 1]} : vector<8x32xbf16> to vector<8x8xbf16>
    %29 = vector.extract_strided_slice %9 {offsets = [0, 8], sizes = [8, 8], strides = [1, 1]} : vector<8x32xbf16> to vector<8x8xbf16>
    %30 = vector.extract_strided_slice %11 {offsets = [0, 8], sizes = [8, 8], strides = [1, 1]} : vector<8x32xbf16> to vector<8x8xbf16>
    %cst_9 = arith.constant dense<0.000000e+00> : vector<8x8xf32>
    %31 = tpu.matmul %28, %29, %cst_9 {dimension_numbers = #tpu.dot_dimension_numbers<[1], [1], [0], [0], [0, 0, 1, 0], [], []>} : vector<8x8xbf16>, vector<8x8xbf16>, vector<8x8xf32> -> vector<8x8xf32>
    %cst_10 = arith.constant dense<0xFF800000> : vector<8xf32>
    %32 = vector.multi_reduction <maximumf>, %31, %cst_10 [1] : vector<8x8xf32> to vector<8xf32>
    %33 = vector.shape_cast %32 : vector<8xf32> to vector<8x1xf32>
    %34 = vector.broadcast %33 : vector<8x1xf32> to vector<8x8xf32>
    %35 = arith.subf %31, %34 : vector<8x8xf32>
    %36 = math.exp %35 : vector<8x8xf32>
    %cst_11 = arith.constant dense<0.000000e+00> : vector<8xf32>
    %37 = vector.multi_reduction <add>, %36, %cst_11 [1] : vector<8x8xf32> to vector<8xf32>
    %38 = vector.shape_cast %37 : vector<8xf32> to vector<8x1xf32>
    %39 = tpu.reciprocal %38 {approx = true} : vector<8x1xf32> -> vector<8x1xf32>
    %40 = arith.truncf %36 : vector<8x8xf32> to vector<8x8xbf16>
    %cst_12 = arith.constant dense<0.000000e+00> : vector<8x8xf32>
    %41 = tpu.matmul %40, %30, %cst_12 {dimension_numbers = #tpu.dot_dimension_numbers<[1], [0], [0], [1], [0, 0, 1, 1], [], []>} : vector<8x8xbf16>, vector<8x8xbf16>, vector<8x8xf32> -> vector<8x8xf32>
    %42 = vector.broadcast %39 : vector<8x1xf32> to vector<8x8xf32>
    %43 = arith.mulf %41, %42 : vector<8x8xf32>
    %44 = vector.extract_strided_slice %7 {offsets = [0, 16], sizes = [8, 8], strides = [1, 1]} : vector<8x32xbf16> to vector<8x8xbf16>
    %45 = vector.extract_strided_slice %9 {offsets = [0, 16], sizes = [8, 8], strides = [1, 1]} : vector<8x32xbf16> to vector<8x8xbf16>
    %46 = vector.extract_strided_slice %11 {offsets = [0, 16], sizes = [8, 8], strides = [1, 1]} : vector<8x32xbf16> to vector<8x8xbf16>
    %cst_13 = arith.constant dense<0.000000e+00> : vector<8x8xf32>
    %47 = tpu.matmul %44, %45, %cst_13 {dimension_numbers = #tpu.dot_dimension_numbers<[1], [1], [0], [0], [0, 0, 1, 0], [], []>} : vector<8x8xbf16>, vector<8x8xbf16>, vector<8x8xf32> -> vector<8x8xf32>
    %cst_14 = arith.constant dense<0xFF800000> : vector<8xf32>
    %48 = vector.multi_reduction <maximumf>, %47, %cst_14 [1] : vector<8x8xf32> to vector<8xf32>
    %49 = vector.shape_cast %48 : vector<8xf32> to vector<8x1xf32>
    %50 = vector.broadcast %49 : vector<8x1xf32> to vector<8x8xf32>
    %51 = arith.subf %47, %50 : vector<8x8xf32>
    %52 = math.exp %51 : vector<8x8xf32>
    %cst_15 = arith.constant dense<0.000000e+00> : vector<8xf32>
    %53 = vector.multi_reduction <add>, %52, %cst_15 [1] : vector<8x8xf32> to vector<8xf32>
    %54 = vector.shape_cast %53 : vector<8xf32> to vector<8x1xf32>
    %55 = tpu.reciprocal %54 {approx = true} : vector<8x1xf32> -> vector<8x1xf32>
    %56 = arith.truncf %52 : vector<8x8xf32> to vector<8x8xbf16>
    %cst_16 = arith.constant dense<0.000000e+00> : vector<8x8xf32>
    %57 = tpu.matmul %56, %46, %cst_16 {dimension_numbers = #tpu.dot_dimension_numbers<[1], [0], [0], [1], [0, 0, 1, 1], [], []>} : vector<8x8xbf16>, vector<8x8xbf16>, vector<8x8xf32> -> vector<8x8xf32>
    %58 = vector.broadcast %55 : vector<8x1xf32> to vector<8x8xf32>
    %59 = arith.mulf %57, %58 : vector<8x8xf32>
    %60 = vector.extract_strided_slice %7 {offsets = [0, 24], sizes = [8, 8], strides = [1, 1]} : vector<8x32xbf16> to vector<8x8xbf16>
    %61 = vector.extract_strided_slice %9 {offsets = [0, 24], sizes = [8, 8], strides = [1, 1]} : vector<8x32xbf16> to vector<8x8xbf16>
    %62 = vector.extract_strided_slice %11 {offsets = [0, 24], sizes = [8, 8], strides = [1, 1]} : vector<8x32xbf16> to vector<8x8xbf16>
    %cst_17 = arith.constant dense<0.000000e+00> : vector<8x8xf32>
    %63 = tpu.matmul %60, %61, %cst_17 {dimension_numbers = #tpu.dot_dimension_numbers<[1], [1], [0], [0], [0, 0, 1, 0], [], []>} : vector<8x8xbf16>, vector<8x8xbf16>, vector<8x8xf32> -> vector<8x8xf32>
    %cst_18 = arith.constant dense<0xFF800000> : vector<8xf32>
    %64 = vector.multi_reduction <maximumf>, %63, %cst_18 [1] : vector<8x8xf32> to vector<8xf32>
    %65 = vector.shape_cast %64 : vector<8xf32> to vector<8x1xf32>
    %66 = vector.broadcast %65 : vector<8x1xf32> to vector<8x8xf32>
    %67 = arith.subf %63, %66 : vector<8x8xf32>
    %68 = math.exp %67 : vector<8x8xf32>
    %cst_19 = arith.constant dense<0.000000e+00> : vector<8xf32>
    %69 = vector.multi_reduction <add>, %68, %cst_19 [1] : vector<8x8xf32> to vector<8xf32>
    %70 = vector.shape_cast %69 : vector<8xf32> to vector<8x1xf32>
    %71 = tpu.reciprocal %70 {approx = true} : vector<8x1xf32> -> vector<8x1xf32>
    %72 = arith.truncf %68 : vector<8x8xf32> to vector<8x8xbf16>
    %cst_20 = arith.constant dense<0.000000e+00> : vector<8x8xf32>
    %73 = tpu.matmul %72, %62, %cst_20 {dimension_numbers = #tpu.dot_dimension_numbers<[1], [0], [0], [1], [0, 0, 1, 1], [], []>} : vector<8x8xbf16>, vector<8x8xbf16>, vector<8x8xf32> -> vector<8x8xf32>
    %74 = vector.broadcast %71 : vector<8x1xf32> to vector<8x8xf32>
    %75 = arith.mulf %73, %74 : vector<8x8xf32>
    %76 = tpu.concatenate %27, %43, %59, %75 in 1 : vector<8x8xf32>, vector<8x8xf32>, vector<8x8xf32>, vector<8x8xf32> -> vector<8x32xf32>
    %77 = arith.truncf %76 : vector<8x32xf32> to vector<8x32xbf16>
    %c0_21 = arith.constant 0 : index
    %c0_22 = arith.constant 0 : index
    %78 = vector.load %arg3[%c0_21, %c0_22] : memref<32x32xbf16, #tpu.memory_space<vmem>>, vector<32x32xbf16>
    %cst_23 = arith.constant dense<0.000000e+00> : vector<8x32xf32>
    %79 = tpu.matmul %77, %78, %cst_23 {dimension_numbers = #tpu.dot_dimension_numbers<[1], [0], [0], [1], [0, 0, 1, 1], [], []>} : vector<8x32xbf16>, vector<32x32xbf16>, vector<8x32xf32> -> vector<8x32xf32>
    %c0_24 = arith.constant 0 : index
    %c0_25 = arith.constant 0 : index
    %80 = vector.load %arg4[%c0_24, %c0_25] : memref<1x32xf32, #tpu.memory_space<vmem>>, vector<1x32xf32>
    %81 = vector.broadcast %80 : vector<1x32xf32> to vector<8x32xf32>
    %82 = arith.addf %79, %81 : vector<8x32xf32>
    %c0_26 = arith.constant 0 : index
    %c0_27 = arith.constant 0 : index
    %c0_28 = arith.constant 0 : index
    %83 = vector.load %arg5[%c0_26, %c0_27, %c0_28] : memref<1x8x32xf32, #tpu.memory_space<vmem>>, vector<1x8x32xf32>
    %84 = vector.shape_cast %83 : vector<1x8x32xf32> to vector<8x32xf32>
    %85 = vector.shape_cast %82 : vector<8x32xf32> to vector<1x8x32xf32>
    tpu.vector_store %arg5[%c0_26, %c0_27, %c0_28], %85 {strides = array<i32>} : memref<1x8x32xf32, #tpu.memory_space<vmem>>, vector<1x8x32xf32>,
    return
  }
  func.func @transform_0(%arg0: i32) -> (i32, i32, i32) {
    %c0_i32 = arith.constant 0 : i32
    %c0_i32_0 = arith.constant 0 : i32
    %c0_i32_1 = arith.constant 0 : i32
    return %arg0, %c0_i32, %c0_i32_0 : i32, i32, i32
  }
  func.func @transform_1(%arg0: i32) -> (i32, i32) {
    %c0_i32 = arith.constant 0 : i32
    %c0_i32_0 = arith.constant 0 : i32
    %c0_i32_1 = arith.constant 0 : i32
    return %c0_i32, %c0_i32_0 : i32, i32
  }
  func.func @transform_2(%arg0: i32) -> (i32, i32) {
    %c0_i32 = arith.constant 0 : i32
    %c0_i32_0 = arith.constant 0 : i32
    %c0_i32_1 = arith.constant 0 : i32
    return %c0_i32, %c0_i32_0 : i32, i32
  }
  func.func @transform_3(%arg0: i32) -> (i32, i32) {
    %c0_i32 = arith.constant 0 : i32
    %c0_i32_0 = arith.constant 0 : i32
    %c0_i32_1 = arith.constant 0 : i32
    return %c0_i32, %c0_i32_0 : i32, i32
  }
  func.func @transform_4(%arg0: i32) -> (i32, i32, i32) {
    %c0_i32 = arith.constant 0 : i32
    %c0_i32_0 = arith.constant 0 : i32
    %c0_i32_1 = arith.constant 0 : i32
    return %arg0, %c0_i32, %c0_i32_0 : i32, i32, i32
  }
}

</mosaic_0001>

<bundles_post_ra>
// kernel: tpu_custom_call.1
= control target key start
LH: loop header
LB: loop body
LE: loop exit
PB: predicated region body
PF: predicated region fallthrough
CT: control target
= control target key end

     0   :  { %9 = vsyncpa [#allocation3], 0  ;;  %s1214_s0 = inlined_call_operand.hbm [shape: bf16[2,8,32], index: 0, kind: input, shape index: {}]   ;;  %s1215_s1 = inlined_call_operand.hbm [shape: bf16[32,96], index: 1, kind: input, shape index: {}]   ;;  %s1216_s2 = inlined_call_operand.hbm [shape: bf16[32,32], index: 2, kind: input, shape index: {}]   ;;  %s1217_s3 = inlined_call_operand.vmem [shape: f32[1,32], index: 3, kind: input, shape index: {}]   ;;  %s1218_s4 = inlined_call_operand.hbm [shape: f32[2,8,32], index: 4, kind: output, shape index: {}]  }
   0x1   :  { %11 = vsyncpa [#allocation3 + $0x1], 0 }
   0x2   :  { %12 = vsyncpa [#allocation6], 0 }
   0x3   :  { %13 = vsyncpa [#allocation4], 0 }
   0x4   :  { %15 = vsyncpa [#allocation4 + $0x1], 0  ;;  %s1027_s15 = smov 0   ;;  %s1029_s16 = smov 0  }
   0x5   :  { %s1031_s17 = smov 0   ;;  %s1033_s18 = smov 0  }
   0x6 LB: > { %s152_s21 = sshll.u32 %s1215_s1, 4  ;;  %s1051_s22 = sadd.s32 4294967295, %s982_s18   ;;  %s982_s18 = sphi %s1033_s18, %s1229_s18   ;;  %s978_s17 = sphi %s1031_s17, %s1228_s17   ;;  %s974_s16 = sphi %s1029_s16, %s1227_s16   ;;  %s970_s15 = sphi %s1027_s15, %s1226_s15   ;;  %s153_s21 = int_to_ptr.hbm [resolvable:$true] %s152_s21 }
   0x7   : > { %p677_p0 = scmp.ge.s32.totalorder %s982_s18, 1  ;;  %p42_p1 = scmp.eq.s32.totalorder %s1051_s22, 0 }
   0x8   : > { %p141_p2 = scmp.lt.s32.totalorder %s982_s18, 3  ;;  %s984_s24 = smov [#allocation5]  }
   0x9   : > { %s154_s25 = sshll.u32 %s984_s24, 4  ;;  %s166_s28 = sshll.u32 %s1216_s2, 4  ;;  %s155_s25 = int_to_ptr.vmem [resolvable:$true] %s154_s25  ;;  %s167_s28 = int_to_ptr.hbm [resolvable:$true] %s166_s28 }
   0xa   : > { %p1056_p3 = pnand %p677_p0, %p141_p2  ;;  %s985_s29 = smov [#allocation7]  }
   0xb   : > { %s168_s30 = sshll.u32 %s985_s29, 4  ;;  %s986_s5 = smov 64   ;;  %s169_s30 = int_to_ptr.vmem [resolvable:$true] %s168_s30 }
   0xc   : > { %p734_p4 = pneg %p1056_p3  ;;  %s987_s6 = smov 4  }
   0xd   : > { %s676_s7 = sadd.s32 4294967294, %s982_s18   ;;  %s1070_s8 = sadd.s32 1, %s982_s18  }
   0xe   : > { %p735_p6 = pnand %p734_p4, %p42_p1  ;;  %s25_s9 = ssub.s32 %s982_s18, %s1070_s8 }
   0xf   : > { %s28_s10 = sadd.s32 1, %s978_s17  ;;  %p26_p7 = scmp.eq.s32.totalorder %s25_s9, 0 }
  0x10   : > { %737 = dma.hbm_to_vmem [thread:$0]  (!%p735_p6), %s153_s21, 256, %s155_s25, [#allocation6], %s986_s5, %s986_s5, %s987_s6  }
  0x11   : > { %740 = dma.hbm_to_vmem [thread:$0]  (!%p735_p6), %s167_s28, 256, %s169_s30, [#allocation6], %s986_s5, %s986_s5, %s987_s6  }
  0x12   : > { %p35_p8 = scmp.ne.s32.totalorder %s978_s17, %s974_s16  ;;  %p36_p9 = scmp.eq.s32.totalorder %s982_s18, 0 }
  0x13   : > { %p41_p10 = scmp.ne.s32.totalorder %s974_s16, %s970_s15  ;;  %p128_p13 = scmp.eq.s32.totalorder %s1051_s22, 1 }
  0x14   : > { %s1081_s11 = scalar_select %p26_p7, %s978_s17, %s28_s10  }
  0x15   : > { %p1083_p11 = por %p36_p9, %p35_p8  ;;  %p1089_p12 = por %p42_p1, %p41_p10 }
  0x16   : > { %p134_p0 = scmp.eq.s32.totalorder %s676_s7, 1  ;;  %p751_p2 = scmp.lt.s32.totalorder %s982_s18, 2 }
  0x17   : > { %s185_s14 = sand.u32 1, %s978_s17   ;;  %p1096_p4 = por %p128_p13, %p35_p8 }
  0x18   : > { %p1100_p6 = por %p134_p0, %p41_p10  ;;  %s681_s21 = sshll.u32 %s185_s14, 2 }
  0x19   : > { %s682_s24 = sshll.u32 %s982_s18, 2  ;;  %s189_s28 = scalar_lea.vmem [#allocation2], %s681_s21 }
  0x1a   : > { %s193_s27 = scalar_lea.hbm %s1214_s0, %s682_s24  ;;  %s197_s29 = sshll.u32 %s189_s28, 4  ;;  %s198_s29 = int_to_ptr.vmem [resolvable:$true] %s197_s29 }
  0x1b   : > { %s195_s30 = sshll.u32 %s193_s27, 4  ;;  %p1110_p7 = pnand %p751_p2, %p1083_p11  ;;  %s196_s30 = int_to_ptr.hbm [resolvable:$true] %s195_s30 }
  0x1c   : > { %s186_s6 = scalar_lea.sflag [#allocation3], %s185_s14  ;;  %s882_s7 = sshra.s32 %s196_s30, 4  ;;  %s883_s7 = int_to_ptr.hbm [resolvable:$true] %s882_s7 }
  0x1d   : > { %s884_s9 = scalar_lea.hbm %s883_s7, 4  ;;  %p886_p9 = pneg %p1110_p7 }
  0x1e   : > { %p885_p8 = scmp.ne.s32.totalorder %s883_s7, %s884_s9  ;;  %s889_s24 = scalar_lea.hbm %s1214_s0, 8 }
  0x1f   : > { %p890_p11 = scmp.lt.s32.totalorder %s883_s7, %s1214_s0  ;;  %p891_p0 = scmp.lt.s32.totalorder %s889_s24, %s884_s9 }
  0x20   : > { %p887_p10 = pnand %p886_p9, %p885_p8 }
  0x21   : > { %p892_p2 = por %p891_p0, %p890_p11 }
  0x22   : > { %p888_p13 = pneg %p887_p10 }
  0x24   : > { %p893_p5 = pnand %p892_p2, %p888_p13 }
  0x26   : > { %896 = shalt.err (!%p893_p5)
}
  0x27   : > { %744 = dma.hbm_to_vmem [thread:$0]  (!%p1110_p7), %s196_s30, 64, %s198_s29, %s186_s6  }
  0x28   : > { %206 = sbr.rel (%p1056_p3) target bundleno = 985 (0x3d9), region = 36  ;;  %s1127_s14 = sand.u32 (!%p1056_p3), 1, %s974_s16  }
  0x29   : > { %s684_s26 = sshll.u32 (!%p1056_p3), %s1127_s14, 2  ;;  %s209_s27 = scalar_lea.sflag (!%p1056_p3), [#allocation3], %s1127_s14 }
  0x2a   : > { %s212_s28 = scalar_lea.vmem (!%p1056_p3), [#allocation2], %s684_s26 }
  0x2d   : > { %957 = dma.done.wait (%p1089_p12), %s209_s27, 64  }
  0x2e   : > { %959 = vsyncadd (%p1089_p12), %s209_s27, 4294967232 }
  0x2f   : > { %961 = dma.done.wait (%p42_p1), [#allocation6], 512  }
  0x30   : > { %963 = vsyncadd (%p42_p1), [#allocation6], 4294966784  ;;  %v719_v0 = vld [vmem:[#allocation5 + $0x8] sm:$0xff]  ;;  %v718_v1 = vld [vmem:[#allocation5] sm:$0xff]  ;;  %vm266_vm0 = vcmask 261120   ;;  %s988_s23 = smov 96  }
  0x31   : > { %276 = vmatpush.bf16.msra.mxu0 %v719_v0  ;;  %v249_v2 = vld [vmem:[%s212_s28] sm:$0xf]  ;;  %s989_s13 = smov 104   ;;  %s990_s29 = smov 120   ;;  %vm291_vm1 = vcmask 64512   ;;  %vm327_vm2 = vcmask 1043456  }
  0x32   : > { %s991_s30 = smov 88   ;;  %s992_s5 = smov 80   ;;  %vm529_vm3 = vcmask 130048   ;;  %vm531_vm4 = vcmask 195584  }
  0x33   : > { %s993_s6 = smov 72   ;;  %s994_s7 = smov 112  }
  0x34   : > { %s995_s9 = smov 64   ;;  %s996_s10 = smov 56  }
  0x35   : > { %277 = vmatpush.bf16.msra.mxu0 %v718_v1  ;;  %s997_s21 = smov 48   ;;  %s998_s24 = smov 40  }
  0x36   : > { %s999_s25 = smov 8   ;;  %s1000_s12 = smov 16  }
  0x37   : > { %s1001_s26 = smov 24   ;;  %s715_s27 = sshll.u32 %s1051_s22, 3 }
  0x38   : > { %696 = vmatmul.msk.bf16.vlgmr.msra.gmra.mxu0 %vm266_vm0, %v249_v2  ;;  %s687_s28 = sshll.u32 %s1127_s14, 3  ;;  %s572_s22 = scalar_lea.sflag [#allocation4], %s1127_s14 }
  0xb5   : > { %v279_v3 = vpop.f32.mrf.mxu0 }
  0xb6   : > { %v283_v4 = vmul.f32 0.35355338, %v279_v3  ;;  %v285_v5 = vpack.c.bf16 %v279_v3, %v279_v3 }
  0xb8   : > { %v284_v6 = vpack.c.bf16 %v283_v4, %v283_v4  ;;  %v287_v7 = vunpack.c.l.b16 %v285_v5 }
  0xba   : > { %v1140_v8 = vpack.c.b16 %v287_v7, %v287_v7  ;;  %v346_v9 = vunpack.c.l.b16 %v284_v6 }
  0xbc   : > { %289 = vrot.lane.b32.xlu0 %v1140_v8, %s988_s23  ;;  %v347_v10 = vpack.c.b16 %v346_v9, %v346_v9 }
  0xbd   : > { %v281_v11 = vpop.f32.mrf.mxu0 }
  0xbe   : > { %460 = vrot.lane.b32.xlu2 %v347_v10, %s989_s13  ;;  %348 = vrot.lane.b32.xlu1 %v347_v10, %s990_s29  ;;  %s582_s29 = scalar_lea.hbm %s1218_s4, %s715_s27 }
  0xc4   : > { %350 = vrot.lane.b32.xlu0 %v1140_v8, %s991_s30 }
  0xc6   : > { %406 = vrot.lane.b32.xlu2 %v1140_v8, %s992_s5  ;;  %462 = vrot.lane.b32.xlu1 %v1140_v8, %s993_s6  ;;  %s247_s6 = scalar_lea.vmem [#allocation8], %s687_s28 }
  0xcc   : > { %404 = vrot.lane.b32.xlu0 %v347_v10, %s994_s7  ;;  %s584_s7 = sshll.u32 %s247_s6, 4  ;;  %s585_s7 = int_to_ptr.vmem [resolvable:$true] %s584_s7 }
  0xce   : > { %322 = vrot.lane.b32.xlu2 %v1140_v8, %s995_s9  ;;  %s586_s9 = sshll.u32 %s582_s29, 4  ;;  %s587_s9 = int_to_ptr.hbm [resolvable:$true] %s586_s9 }
  0xd6   : > { %382 = vrot.lane.b32.xlu2 %v1140_v8, %s996_s10  ;;  %s926_s10 = sshra.s32 %s587_s9, 4  ;;  %s927_s10 = int_to_ptr.hbm [resolvable:$true] %s926_s10 }
  0xd7   : > { %p933_p12 = scmp.lt.s32.totalorder %s927_s10, %s1218_s4 }
 0x118   : > { %v461_v12 = vpop.permute.xlu2 %460 }
 0x120   : > { %v407_v13 = vpop.permute.xlu2 %406 }
 0x121   : > { %v412_v14 = vsel %vm291_vm1, %v407_v13, 0 }
 0x122   : > { %421 = vmatpush.bf16.xpose.msrb.mxu0 %v412_v14 }
 0x128   : > { %v323_v15 = vpop.permute.xlu2 %322 }
 0x129   : > { %v329_v16 = vsel %vm327_vm2, %v323_v15, 0 }
 0x12a   : > { %338 = vmatpush.bf16.msra.mxu2 %v329_v16 }
 0x12e   : > { %v290_v17 = vpop.permute.xlu0 %289 }
 0x12f   : > { %v296_v18 = vsel %vm291_vm1, %v290_v17, 0 }
 0x130   : > { %305 = vmatpush.bf16.xpose.msra.mxu1 %v296_v18  ;;  %v383_v19 = vpop.permute.xlu2 %382  ;;  %v349_v20 = vpop.permute.xlu1 %348 }
 0x131   : > { %v388_v21 = vsel %vm327_vm2, %v383_v19, 0 }
 0x132   : > { %397 = vmatpush.bf16.msrb.mxu2 %v388_v21  ;;  %v720_v21 = vld [vmem:[#allocation7] sm:$0xff] }
 0x136   : > { %v351_v22 = vpop.permute.xlu0 %350 }
 0x137   : > { %697 = vmatmul.msk.bf16.vlgmr.msra.gmra.mxu1 %vm291_vm1, %v284_v6  ;;  %v356_v23 = vsel %vm291_vm1, %v351_v22, 0 }
 0x138   : > { %365 = vmatpush.bf16.xpose.msra.mxu3 %v356_v23  ;;  %v463_v24 = vpop.permute.xlu1 %462 }
 0x139   : > { %v468_v25 = vsel %vm291_vm1, %v463_v24, 0 }
 0x13e   : > { %v405_v26 = vpop.permute.xlu0 %404 }
 0x13f   : > { %699 = vmatmul.msk.bf16.vlgmr.msra.gmra.mxu3 %vm291_vm1, %v349_v20  ;;  %701 = vmatmul.msk.bf16.vlgmr.msrb.gmra.mxu0 %vm291_vm1, %v405_v26  ;;  %v721_v20 = vld [vmem:[#allocation7 + $0x8] sm:$0xff] }
 0x140   : > { %477 = vmatpush.bf16.xpose.msrb.mxu3 %v468_v25  ;;  %563 = vmatpush.bf16.msra.mxu0 %v721_v20 }
 0x144   : > { %564 = vmatpush.bf16.msra.mxu0 %v720_v21 }
 0x14f   : > { %703 = vmatmul.msk.bf16.vlgmr.msrb.gmra.mxu3 %vm291_vm1, %v461_v12 }
 0x1b4   : > { %v307_v27 = vpop.f32.mrf.mxu1 }
 0x1b5   : > { %v311_v28 = vsel %vm291_vm1, %v307_v27, -inf }
 0x1b6   : > { %312 = vmax.xlane.f32.xlu1 %v311_v28 }
 0x1bc   : > { %v309_v29 = vpop.f32.mrf.mxu1  ;;  %v423_v30 = vpop.f32.mrf.mxu0 }
 0x1bd   : > { %v427_v31 = vsel %vm291_vm1, %v423_v30, -inf }
 0x1be   : > { %428 = vmax.xlane.f32.xlu1 %v427_v31 }
 0x1c2   : > { %v367_v32 = vpop.f32.mrf.mxu3 }
 0x1c3   : > { %v371_v33 = vsel %vm291_vm1, %v367_v32, -inf }
 0x1c4   : > { %372 = vmax.xlane.f32.xlu0 %v371_v33  ;;  %v425_v34 = vpop.f32.mrf.mxu0 }
 0x1ca   : > { %v369_v35 = vpop.f32.mrf.mxu3 }
 0x1d2   : > { %v479_v36 = vpop.f32.mrf.mxu3 }
 0x1d3   : > { %v483_v37 = vsel %vm291_vm1, %v479_v36, -inf }
 0x1d4   : > { %484 = vmax.xlane.f32.xlu2 %v483_v37 }
 0x1d7   : > { %438 = vrot.lane.b32.xlu1 %v1140_v8, %s997_s21  ;;  %s928_s21 = scalar_lea.hbm %s927_s10, 8 }
 0x1d8   : > { %494 = vrot.lane.b32.xlu0 %v1140_v8, %s998_s24  ;;  %p929_p1 = scmp.ne.s32.totalorder %s927_s10, %s928_s21 }
 0x1da   : > { %v481_v38 = vpop.f32.mrf.mxu3  ;;  %p930_p3 = pnand %p929_p1, %p1096_p4 }
 0x1dc   : > { %p931_p5 = pneg %p930_p3 }
 0x229   : > { %v313_v39 = vpop.xlane.xlu1 %312 }
 0x22a   : > { %v314_v40 = vsub.f32 %v307_v27, %v313_v39 }
 0x22c   : > { %v315_v41 = vmul.f32 1.442695, %v314_v40 }
 0x22e   : > { %806 = vpow2.f32 %v315_v41 }
 0x231   : > { %v429_v44 = vpop.xlane.xlu1 %428 }
 0x232   : > { %v430_v47 = vsub.f32 %v423_v30, %v429_v44 }
 0x234   : > { %v807_v42 = vpop.eup %806  ;;  %v431_v49 = vmul.f32 1.442695, %v430_v47 }
 0x235   : > { %v321_v43 = vpack.c.bf16 %v807_v42, %v807_v42  ;;  %v317_v1 = vsel %vm291_vm1, %v807_v42, 0.0 }
 0x237   : > { %v373_v45 = vpop.xlane.xlu0 %372  ;;  %698 = vmatmul.msk.bf16.vlgmr.msra.gmra.mxu2 %vm291_vm1, %v321_v43 }
 0x238   : > { %v374_v46 = vsub.f32 %v367_v32, %v373_v45  ;;  %v805_v32 = vld [vmem:[%s1217_s3] ss:$0 sm:$0xff] }
 0x23a   : > { %v375_v48 = vmul.f32 1.442695, %v374_v46 }
 0x23c   : > { %808 = vpow2.f32 %v375_v48 }
 0x23d   : > { %810 = vpow2.f32 %v431_v49 }
 0x242   : > { %v809_v50 = vpop.eup %808 }
 0x243   : > { %v377_v51 = vsel %vm291_vm1, %v809_v50, 0.0  ;;  %v381_v52 = vpack.c.bf16 %v809_v50, %v809_v50  ;;  %v811_v54 = vpop.eup %810 }
 0x244   : > { %378 = vadd.xlane.f32.xlu2 %v377_v51  ;;  %v433_v61 = vsel %vm291_vm1, %v811_v54, 0.0  ;;  %v437_v62 = vpack.c.bf16 %v811_v54, %v811_v54 }
 0x247   : > { %v485_v53 = vpop.xlane.xlu2 %484  ;;  %700 = vmatmul.msk.bf16.vlgmr.msrb.gmra.mxu2 %vm291_vm1, %v381_v52 }
 0x248   : > { %v486_v55 = vsub.f32 %v479_v36, %v485_v53 }
 0x249   : > { %v439_v56 = vpop.permute.xlu1 %438 }
 0x24a   : > { %v487_v57 = vmul.f32 1.442695, %v486_v55  ;;  %v495_v58 = vpop.permute.xlu0 %494  ;;  %v444_v59 = vsel %vm327_vm2, %v439_v56, 0 }
 0x24b   : > { %v500_v60 = vsel %vm327_vm2, %v495_v58, 0  ;;  %453 = vmatpush.bf16.msrb.mxu1 %v444_v59 }
 0x24c   : > { %812 = vpow2.f32 %v487_v57  ;;  %509 = vmatpush.bf16.msra.mxu2 %v500_v60  ;;  %434 = vadd.xlane.f32.xlu2 %v433_v61 }
 0x24e   : > { %702 = vmatmul.msk.bf16.vlgmr.msrb.gmra.mxu1 %vm291_vm1, %v437_v62 }
 0x252   : > { %v813_v63 = vpop.eup %812 }
 0x253   : > { %v489_v0 = vsel %vm291_vm1, %v813_v63, 0.0  ;;  %v493_v2 = vpack.c.bf16 %v813_v63, %v813_v63 }
 0x254   : > { %490 = vadd.xlane.f32.xlu0 %v489_v0  ;;  %318 = vadd.xlane.f32.xlu2 %v317_v1 }
 0x257   : > { %704 = vmatmul.msk.bf16.vlgmr.msra.gmra.mxu2 %vm291_vm1, %v493_v2 }
 0x2b7   : > { %v379_v3 = vpop.xlane.xlu2 %378 }
 0x2b8   : > { %814 = vrcp.f32 %v379_v3 }
 0x2ba   : > { %v340_v4 = vpop.f32.mrf.mxu2 }
 0x2be   : > { %v815_v7 = vpop.eup %814 }
 0x2bf   : > { %v435_v5 = vpop.xlane.xlu2 %434 }
 0x2c0   : > { %816 = vrcp.f32 %v435_v5 }
 0x2c2   : > { %v342_v6 = vpop.f32.mrf.mxu2 }
 0x2c6   : > { %v817_v9 = vpop.eup %816 }
 0x2c7   : > { %v491_v13 = vpop.xlane.xlu0 %490  ;;  %v319_v22 = vpop.xlane.xlu2 %318 }
 0x2c8   : > { %818 = vrcp.f32 %v491_v13 }
 0x2c9   : > { %820 = vrcp.f32 %v319_v22 }
 0x2ca   : > { %v399_v8 = vpop.f32.mrf.mxu2 }
 0x2cb   : > { %v403_v10 = vmul.f32 %v815_v7, %v399_v8  ;;  %v455_v11 = vpop.f32.mrf.mxu1 }
 0x2cc   : > { %v459_v12 = vmul.f32 %v817_v9, %v455_v11 }
 0x2cd   : > { %517 = vrot.lane.b32.xlu1 %v403_v10, %s999_s25 }
 0x2ce   : > { %521 = vrot.lane.b32.xlu2 %v459_v12, %s1000_s12  ;;  %v819_v16 = vpop.eup %818  ;;  %s932_s12 = scalar_lea.hbm %s1218_s4, 16 }
 0x2cf   : > { %v821_v23 = vpop.eup %820  ;;  %p934_p7 = scmp.lt.s32.totalorder %s932_s12, %s928_s21 }
 0x2d0   : > { %v344_v25 = vmul.f32 %v821_v23, %v340_v4 }
 0x2d1   : > { %p935_p8 = por %p934_p7, %p933_p12 }
 0x2d2   : > { %v401_v14 = vpop.f32.mrf.mxu2 }
 0x2d3   : > { %v457_v15 = vpop.f32.mrf.mxu1  ;;  %p936_p9 = pnand %p935_p8, %p931_p5 }
 0x2da   : > { %v511_v17 = vpop.f32.mrf.mxu2 }
 0x2db   : > { %v515_v18 = vmul.f32 %v819_v16, %v511_v17 }
 0x2dd   : > { %525 = vrot.lane.b32.xlu1 %v515_v18, %s1001_s26 }
 0x2e2   : > { %v513_v19 = vpop.f32.mrf.mxu2 }
 0x328   : > { %v522_v27 = vpop.permute.xlu2 %521 }
 0x33f   : > { %v518_v24 = vpop.permute.xlu1 %517 }
 0x340   : > { %v528_v26 = vsel %vm291_vm1, %v344_v25, %v518_v24 }
 0x341   : > { %v530_v28 = vsel %vm529_vm3, %v528_v26, %v522_v27 }
 0x34f   : > { %v526_v29 = vpop.permute.xlu1 %525 }
 0x350   : > { %v532_v30 = vsel %vm531_vm4, %v530_v28, %v526_v29 }
 0x351   : > { %v533_v31 = vpack.c.bf16 %v532_v30, %v532_v30 }
 0x353   : > { %713 = vmatmul.msk.bf16.vlgmr.msra.gmra.mxu0 %vm266_vm0, %v533_v31 }
 0x3d0   : > { %v566_v33 = vpop.f32.mrf.mxu0 }
 0x3d1   : > { %v567_v34 = vadd.f32 %v805_v32, %v566_v33 }
 0x3d3   : > { %570 = vst.msk [vmem:[%s247_s6] sm:$0xff] %vm266_vm0, %v567_v34 }
 0x3d4   : > { %939 = shalt.err (!%p936_p9)
}
 0x3d5   : > { %732 = dma.vmem_to_hbm [thread:$0]  (%p1096_p4), %s585_s7, 128, %s587_s9, %s572_s22  }
 0x3d8   : > { %v568_v35 = vpop.f32.mrf.mxu0 }
 0x3d9 PF: > { %s598_s14 = sand.u32 1, %s970_s15   ;;  %p1225_p10 = scmp.ge.s32.totalorder %s982_s18, 2 }
 0x3da   : > { %s599_s28 = scalar_lea.sflag [#allocation4], %s598_s14 }
 0x3db   : > { %p746_p13 = pnand %p1225_p10, %p1100_p6 }
 0x3dd   : > { %p747_p11 = pneg %p746_p13 }
 0x3df   : > { %965 = dma.done.wait (%p747_p11), %s599_s28, 128  }
 0x3e0   : > { %967 = vsyncadd (%p747_p11), %s599_s28, 4294967168  ;;  %p18_p0 = scmp.ge.s32.totalorder %s1070_s8, 4   ;;  %s1226_s15 = smov %s974_s16 }
 0x3e1   : > { %s1227_s16 = smov %s978_s17  ;;  %s1228_s17 = smov %s1081_s11 }
 0x3e2   : > { %s1229_s18 = smov %s1070_s8  ;;  %20 = sbr.rel (!%p18_p0) target bundleno = 6 (0x6), region = 89 }
 0x3e7   :  { %605 = vsyncpa [#allocation3], 1 }
 0x3e8   :  { %607 = vsyncpa [#allocation3 + $0x1], 1 }
 0x3e9   :  { %608 = vsyncpa [#allocation6], 1 }
 0x3ea   :  { %609 = vsyncpa [#allocation4], 1 }
 0x3eb   :  { %611 = vsyncpa [#allocation4 + $0x1], 1 }

</bundles_post_ra>
